<compile_context>
chip_gen: v6e
topology: v6e:2x2x1
jax: 0.10.0
libtpu: 0.0.40
codegen_flags: <defaults>
</compile_context>

<pallas_src>
import functools

import jax
import jax.numpy as jnp
from jax.experimental import pallas as pl
from jax.experimental.pallas import tpu as pltpu

LANE = 128
SUBLANE = 8


def _round_up(x, m):
    return (x + m - 1) // m * m


def encoder_kernel(
    idx_ref,                         # (B_pad, 3) int32  VMEM: s, o, t indices
    slab_ref,                        # (rows, 128) f32   VMEM: packed params
    out_ref,                         # (B_pad, 128) f32  single lane-dense slab
    *, vocab_size, hidden_dim, num_predicates, num_relations, embedding_dim,
):
    V, H = vocab_size, hidden_dim
    P, R, E = num_predicates, num_relations, embedding_dim
    B, n_pad = out_ref.shape

    # ---- one-hot MXU gather: onehot[b, v] = #{k : idx[b, k] == v} ----------
    iota_v = jax.lax.broadcasted_iota(jnp.int32, (B, V), 1)
    onehot = jnp.zeros((B, V), jnp.float32)
    for k in range(3):                              # s, o, t (static unroll)
        col = idx_ref[:, k:k + 1]                   # (B, 1) int32
        onehot = onehot + (iota_v == col).astype(jnp.float32)

    # ---- static views into the packed parameter slab (free ref slices) -----
    m_tab = slab_ref[0:V, :]                        # (V, 128): emb@w_enc + b_enc/3 in cols [0,H)
    w_heads = slab_ref[V:V + H, :]                  # (H, 128): fused head weights
    b_heads = slab_ref[V + H:V + H + 1, :]          # (1, 128): fused head biases

    # ---- h = tanh((e_s + e_o + e_t) @ w_enc + b_enc), enc-linear pre-folded -
    h_pre = jnp.dot(onehot, m_tab, preferred_element_type=jnp.float32)  # (B, 128)
    h = jnp.tanh(h_pre[:, :H])                      # (B, H)
    # TODO(synk): nn.Dropout() treated as identity (inference / eval mode).

    # ---- fused head projection: one K=H, N=128 lane-dense matmul -----------
    heads = jnp.dot(h, w_heads, preferred_element_type=jnp.float32) + b_heads  # (B, 128)

    # ---- masked in-place epilogue on the (B, 128) vreg ----------------------
    lane = jax.lax.broadcasted_iota(jnp.int32, (B, n_pad), 1)
    o1, o2, o3, o4 = P, P + R, P + R + E, P + R + 2 * E
    mask_pred = lane < o1
    mask_rel = (lane >= o1) & (lane < o2)
    mask_loc = (lane >= o2) & (lane < o3)
    mask_scale = (lane >= o3) & (lane < o4)

    def masked_softmax(x, mask):
        xm = jnp.where(mask, x, -1e30)
        m = jnp.max(xm, axis=-1, keepdims=True)
        e = jnp.where(mask, jnp.exp(xm - m), 0.0)
        d = jnp.sum(e, axis=-1, keepdims=True)
        r = pl.reciprocal(d, approx=True)           # EUP vrcp (free slot here)
        r = r * (2.0 - d * r)                       # one Newton step -> ~f32 accuracy
        return e * r

    sm_pred = masked_softmax(heads, mask_pred)      # nn.Softmax (dim=1)
    sm_rel = masked_softmax(heads, mask_rel)
    # nn.Softplus(beta=1, threshold=20)
    sp = jnp.where(heads > 20.0, heads,
                   jnp.log1p(jnp.exp(jnp.minimum(heads, 20.0))))

    out = jnp.where(mask_pred, sm_pred,
          jnp.where(mask_rel, sm_rel,
          jnp.where(mask_loc, heads,
          jnp.where(mask_scale, sp, jnp.zeros_like(heads)))))

    # single unmasked, lane-dense store
    out_ref[...] = out


def pack_params(params):
    """Fold enc_linear into the embedding table and fuse all head linears +
    biases into one lane-dense (rows, 128) f32 slab. Done once, outside jit."""
    emb = params["word_embeddings"]                 # (V, E)
    V, E = emb.shape
    H = params["w_enc"].shape[1]
    P = params["w_pred"].shape[1]
    R = params["w_rel"].shape[1]
    total = P + R + 2 * E
    n_pad = _round_up(max(total, LANE), LANE)
    rows = _round_up(V + H + 1, SUBLANE)

    # each batch row sums exactly 3 one-hot rows -> 3 * (b_enc / 3) = b_enc
    m_tab = emb @ params["w_enc"] + params["b_enc"] / 3.0        # (V, H)

    slab = jnp.zeros((rows, n_pad), jnp.float32)
    slab = slab.at[0:V, 0:H].set(m_tab)
    slab = slab.at[V:V + H, 0:P].set(params["w_pred"])
    slab = slab.at[V:V + H, P:P + R].set(params["w_rel"])
    slab = slab.at[V:V + H, P + R:P + R + E].set(params["w_loc"])
    slab = slab.at[V:V + H, P + R + E:total].set(params["w_scale"])
    b_row = jnp.concatenate([params["b_pred"], params["b_rel"],
                             params["b_loc"], params["b_scale"]], axis=1)
    slab = slab.at[V + H:V + H + 1, 0:total].set(b_row)

    return dict(slab=slab)


def simple_encoder_forward(s, o, t, packed, *, vocab_size, embedding_dim,
                           hidden_dim, num_predicates, num_relations):
    slab = packed["slab"]
    rows, n_pad = slab.shape
    V, E, H = vocab_size, embedding_dim, hidden_dim
    P, R = num_predicates, num_relations
    B = s.shape[0]
    B_pad = _round_up(B, SUBLANE)                   # f32 sublane tile

    idx = jnp.stack([s, o, t], axis=1).astype(jnp.int32)          # (B, 3)
    if B_pad != B:
        idx = jnp.pad(idx, ((0, B_pad - B), (0, 0)))

    kernel = functools.partial(
        encoder_kernel,
        vocab_size=V, hidden_dim=H, embedding_dim=E,
        num_predicates=P, num_relations=R,
    )

    heads = pl.pallas_call(
        kernel,
        out_shape=jax.ShapeDtypeStruct((B_pad, n_pad), jnp.float32),
        grid=(1,),
        in_specs=[
            pl.BlockSpec((B_pad, 3), lambda i: (0, 0)),            # indices
            pl.BlockSpec((rows, n_pad), lambda i: (0, 0)),         # packed params
        ],
        out_specs=pl.BlockSpec((B_pad, n_pad), lambda i: (0, 0)),
        compiler_params=pltpu.CompilerParams(
            dimension_semantics=("arbitrary",),
        ),
    )(idx, slab)

    # split the lane-dense slab back into the module's four outputs (glue)
    prob_pred = heads[:B, :P]
    prob_rel = heads[:B, P:P + R]
    z_loc = heads[:B, P + R:P + R + E]
    z_scale_vec = heads[:B, P + R + E:P + R + 2 * E]

    # diagonalize: (B, E) -> (B, E, E), matches the module's return signature.
    # TODO(synk): consumers that only need the diagonal should take z_scale_vec.
    z_scale = jnp.eye(E, dtype=z_scale_vec.dtype)[None, :, :] * z_scale_vec[:, None, :]
    return prob_pred, prob_rel, z_loc, z_scale


def init_params(key, vocab_size, embedding_dim, hidden_dim,
                num_predicates, num_relations):
    """Deterministic synthetic parameters (shapes follow the module __init__).
    Linear weights stored as (in, out); biases as (1, out)."""
    ks = jax.random.split(key, 11)

    def lin(kw, kb, fan_in, fan_out):
        bound = 1.0 / jnp.sqrt(fan_in)
        w = jax.random.uniform(kw, (fan_in, fan_out), jnp.float32, -bound, bound)
        b = jax.random.uniform(kb, (1, fan_out), jnp.float32, -bound, bound)
        return w, b

    word_embeddings = jax.random.normal(ks[0], (vocab_size, embedding_dim), jnp.float32)
    w_enc, b_enc = lin(ks[1], ks[2], embedding_dim, hidden_dim)
    w_pred, b_pred = lin(ks[3], ks[4], hidden_dim, num_predicates)
    w_rel, b_rel = lin(ks[5], ks[6], hidden_dim, num_relations)
    w_loc, b_loc = lin(ks[7], ks[8], hidden_dim, embedding_dim)
    w_scale, b_scale = lin(ks[9], ks[10], hidden_dim, embedding_dim)

    return dict(
        word_embeddings=word_embeddings,
        w_enc=w_enc, b_enc=b_enc,
        w_pred=w_pred, b_pred=b_pred,
        w_rel=w_rel, b_rel=b_rel,
        w_loc=w_loc, b_loc=b_loc,
        w_scale=w_scale, b_scale=b_scale,
    )


def reference_forward(s, o, t, params):
    """Pure-JAX reference of the PyTorch module forward."""
    emb = params["word_embeddings"]
    h = jnp.take(emb, s, axis=0) + jnp.take(emb, o, axis=0) + jnp.take(emb, t, axis=0)
    h = jnp.tanh(h @ params["w_enc"] + params["b_enc"])
    prob_pred = jax.nn.softmax(h @ params["w_pred"] + params["b_pred"], axis=-1)
    prob_rel = jax.nn.softmax(h @ params["w_rel"] + params["b_rel"], axis=-1)
    z_loc = h @ params["w_loc"] + params["b_loc"]
    z_scale_vec = jax.nn.softplus(h @ params["w_scale"] + params["b_scale"])
    E = emb.shape[1]
    z_scale = jnp.eye(E, dtype=z_scale_vec.dtype)[None, :, :] * z_scale_vec[:, None, :]
    return prob_pred, prob_rel, z_loc, z_scale


if __name__ == "__main__":
    # Small synthetic config
    VOCAB = 64
    EMB = 32
    HIDDEN = 32
    NUM_PRED = 16
    NUM_REL = 8
    BATCH = 8

    key = jax.random.PRNGKey(0)
    k_params, k_s, k_o, k_t = jax.random.split(key, 4)

    params = init_params(k_params, VOCAB, EMB, HIDDEN, NUM_PRED, NUM_REL)
    packed = pack_params(params)

    s = jax.random.randint(k_s, (BATCH,), 0, VOCAB, dtype=jnp.int32)
    o = jax.random.randint(k_o, (BATCH,), 0, VOCAB, dtype=jnp.int32)
    t = jax.random.randint(k_t, (BATCH,), 0, VOCAB, dtype=jnp.int32)

    fwd = jax.jit(functools.partial(
        simple_encoder_forward,
        vocab_size=VOCAB, embedding_dim=EMB, hidden_dim=HIDDEN,
        num_predicates=NUM_PRED, num_relations=NUM_REL))

    prob_pred, prob_rel, z_loc, z_scale = fwd(s, o, t, packed)
    jax.block_until_ready((prob_pred, prob_rel, z_loc, z_scale))

    # shapes
    assert prob_pred.shape == (BATCH, NUM_PRED)
    assert prob_rel.shape == (BATCH, NUM_REL)
    assert z_loc.shape == (BATCH, EMB)
    assert z_scale.shape == (BATCH, EMB, EMB)

    # softmax rows sum to 1 (Newton-refined approx reciprocal stays well inside)
    assert jnp.allclose(jnp.sum(prob_pred, axis=-1), 1.0, atol=1e-5)
    assert jnp.allclose(jnp.sum(prob_rel, axis=-1), 1.0, atol=1e-5)

    # numerical check vs pure-JAX reference (loose tolerance for transcendentals)
    rp, rr, rl, rs = jax.jit(reference_forward)(s, o, t, params)
    assert jnp.allclose(prob_pred, rp, atol=1e-4, rtol=1e-4)
    assert jnp.allclose(prob_rel, rr, atol=1e-4, rtol=1e-4)
    assert jnp.allclose(z_loc, rl, atol=1e-4, rtol=1e-4)
    assert jnp.allclose(z_scale, rs, atol=1e-4, rtol=1e-4)

    print("KERNEL_OK")
</pallas_src>

<mosaic_0001>
module attributes {stable_mosaic.version = 11 : i64} {
  func.func @encoder_kernel(%arg0: i32, %arg1: memref<8x3xi32, #tpu.memory_space<vmem>>, %arg2: memref<104x128xf32, #tpu.memory_space<vmem>>, %arg3: memref<8x128xf32, #tpu.memory_space<vmem>>) attributes {dimension_semantics = [#tpu.dimension_semantics<arbitrary>], iteration_bounds = array<i64: 1>, scalar_prefetch = 0 : i64, scratch_operands = 0 : i64, tpu.core_type = #tpu.core_type<tc>, window_params = [{pipeline_mode = #tpu.pipeline_mode<synchronous>, transform_indices = @transform_0, window_bounds = array<i64: 8, 3>}, {pipeline_mode = #tpu.pipeline_mode<synchronous>, transform_indices = @transform_1, window_bounds = array<i64: 104, 128>}, {pipeline_mode = #tpu.pipeline_mode<synchronous>, transform_indices = @transform_2, window_bounds = array<i64: 8, 128>}]} {
    %0 = tpu.iota {dimensions = array<i32: 1>} : vector<8x64xi32>
    %cst = arith.constant 0.000000e+00 : f32
    %1 = vector.broadcast %cst : f32 to vector<8x64xf32>
    %c0 = arith.constant 0 : index
    %c0_0 = arith.constant 0 : index
    %2 = vector.load %arg1[%c0, %c0_0] : memref<8x3xi32, #tpu.memory_space<vmem>>, vector<8x1xi32>
    %3 = vector.broadcast %2 : vector<8x1xi32> to vector<8x64xi32>
    %4 = arith.cmpi eq, %0, %3 : vector<8x64xi32>
    %5 = arith.extui %4 : vector<8x64xi1> to vector<8x64xi32>
    %6 = arith.sitofp %5 : vector<8x64xi32> to vector<8x64xf32>
    %7 = arith.addf %1, %6 : vector<8x64xf32>
    %c0_1 = arith.constant 0 : index
    %c1 = arith.constant 1 : index
    %8 = vector.load %arg1[%c0_1, %c1] : memref<8x3xi32, #tpu.memory_space<vmem>>, vector<8x1xi32>
    %9 = vector.broadcast %8 : vector<8x1xi32> to vector<8x64xi32>
    %10 = arith.cmpi eq, %0, %9 : vector<8x64xi32>
    %11 = arith.extui %10 : vector<8x64xi1> to vector<8x64xi32>
    %12 = arith.sitofp %11 : vector<8x64xi32> to vector<8x64xf32>
    %13 = arith.addf %7, %12 : vector<8x64xf32>
    %c0_2 = arith.constant 0 : index
    %c2 = arith.constant 2 : index
    %14 = vector.load %arg1[%c0_2, %c2] : memref<8x3xi32, #tpu.memory_space<vmem>>, vector<8x1xi32>
    %15 = vector.broadcast %14 : vector<8x1xi32> to vector<8x64xi32>
    %16 = arith.cmpi eq, %0, %15 : vector<8x64xi32>
    %17 = arith.extui %16 : vector<8x64xi1> to vector<8x64xi32>
    %18 = arith.sitofp %17 : vector<8x64xi32> to vector<8x64xf32>
    %19 = arith.addf %13, %18 : vector<8x64xf32>
    %c0_3 = arith.constant 0 : index
    %c0_4 = arith.constant 0 : index
    %20 = vector.load %arg2[%c0_3, %c0_4] : memref<104x128xf32, #tpu.memory_space<vmem>>, vector<64x128xf32>
    %c64 = arith.constant 64 : index
    %c0_5 = arith.constant 0 : index
    %21 = vector.load %arg2[%c64, %c0_5] : memref<104x128xf32, #tpu.memory_space<vmem>>, vector<32x128xf32>
    %c96 = arith.constant 96 : index
    %c0_6 = arith.constant 0 : index
    %22 = vector.load %arg2[%c96, %c0_6] : memref<104x128xf32, #tpu.memory_space<vmem>>, vector<1x128xf32>
    %cst_7 = arith.constant dense<0.000000e+00> : vector<8x128xf32>
    %23 = tpu.matmul %19, %20, %cst_7 {dimension_numbers = #tpu.dot_dimension_numbers<[1], [0], [0], [1], [0, 0, 1, 1], [], []>} : vector<8x64xf32>, vector<64x128xf32>, vector<8x128xf32> -> vector<8x128xf32>
    %24 = vector.extract_strided_slice %23 {offsets = [0, 0], sizes = [8, 32], strides = [1, 1]} : vector<8x128xf32> to vector<8x32xf32>
    %25 = math.tanh %24 : vector<8x32xf32>
    %cst_8 = arith.constant dense<0.000000e+00> : vector<8x128xf32>
    %26 = tpu.matmul %25, %21, %cst_8 {dimension_numbers = #tpu.dot_dimension_numbers<[1], [0], [0], [1], [0, 0, 1, 1], [], []>} : vector<8x32xf32>, vector<32x128xf32>, vector<8x128xf32> -> vector<8x128xf32>
    %27 = vector.broadcast %22 : vector<1x128xf32> to vector<8x128xf32>
    %28 = arith.addf %26, %27 : vector<8x128xf32>
    %29 = tpu.iota {dimensions = array<i32: 1>} : vector<8x128xi32>
    %c16_i32 = arith.constant 16 : i32
    %30 = vector.broadcast %c16_i32 : i32 to vector<8x128xi32>
    %31 = arith.cmpi slt, %29, %30 : vector<8x128xi32>
    %c16_i32_9 = arith.constant 16 : i32
    %32 = vector.broadcast %c16_i32_9 : i32 to vector<8x128xi32>
    %33 = arith.cmpi sge, %29, %32 : vector<8x128xi32>
    %c24_i32 = arith.constant 24 : i32
    %34 = vector.broadcast %c24_i32 : i32 to vector<8x128xi32>
    %35 = arith.cmpi slt, %29, %34 : vector<8x128xi32>
    %36 = arith.andi %33, %35 : vector<8x128xi1>
    %c24_i32_10 = arith.constant 24 : i32
    %37 = vector.broadcast %c24_i32_10 : i32 to vector<8x128xi32>
    %38 = arith.cmpi sge, %29, %37 : vector<8x128xi32>
    %c56_i32 = arith.constant 56 : i32
    %39 = vector.broadcast %c56_i32 : i32 to vector<8x128xi32>
    %40 = arith.cmpi slt, %29, %39 : vector<8x128xi32>
    %41 = arith.andi %38, %40 : vector<8x128xi1>
    %c56_i32_11 = arith.constant 56 : i32
    %42 = vector.broadcast %c56_i32_11 : i32 to vector<8x128xi32>
    %43 = arith.cmpi sge, %29, %42 : vector<8x128xi32>
    %c88_i32 = arith.constant 88 : i32
    %44 = vector.broadcast %c88_i32 : i32 to vector<8x128xi32>
    %45 = arith.cmpi slt, %29, %44 : vector<8x128xi32>
    %46 = arith.andi %43, %45 : vector<8x128xi1>
    %cst_12 = arith.constant -1.000000e+30 : f32
    %47 = vector.broadcast %cst_12 : f32 to vector<8x128xf32>
    %48 = arith.select %31, %28, %47 : vector<8x128xi1>, vector<8x128xf32>
    %cst_13 = arith.constant dense<0xFF800000> : vector<8xf32>
    %49 = vector.multi_reduction <maximumf>, %48, %cst_13 [1] : vector<8x128xf32> to vector<8xf32>
    %50 = vector.shape_cast %49 : vector<8xf32> to vector<8x1xf32>
    %51 = vector.broadcast %50 : vector<8x1xf32> to vector<8x128xf32>
    %52 = arith.subf %48, %51 : vector<8x128xf32>
    %53 = math.exp %52 : vector<8x128xf32>
    %cst_14 = arith.constant 0.000000e+00 : f32
    %54 = vector.broadcast %cst_14 : f32 to vector<8x128xf32>
    %55 = arith.select %31, %53, %54 : vector<8x128xi1>, vector<8x128xf32>
    %cst_15 = arith.constant dense<0.000000e+00> : vector<8xf32>
    %56 = vector.multi_reduction <add>, %55, %cst_15 [1] : vector<8x128xf32> to vector<8xf32>
    %57 = vector.shape_cast %56 : vector<8xf32> to vector<8x1xf32>
    %58 = tpu.reciprocal %57 {approx = true} : vector<8x1xf32> -> vector<8x1xf32>
    %59 = arith.mulf %57, %58 : vector<8x1xf32>
    %cst_16 = arith.constant 2.000000e+00 : f32
    %60 = vector.broadcast %cst_16 : f32 to vector<8x1xf32>
    %61 = arith.subf %60, %59 : vector<8x1xf32>
    %62 = arith.mulf %58, %61 : vector<8x1xf32>
    %63 = vector.broadcast %62 : vector<8x1xf32> to vector<8x128xf32>
    %64 = arith.mulf %55, %63 : vector<8x128xf32>
    %cst_17 = arith.constant -1.000000e+30 : f32
    %65 = vector.broadcast %cst_17 : f32 to vector<8x128xf32>
    %66 = arith.select %36, %28, %65 : vector<8x128xi1>, vector<8x128xf32>
    %cst_18 = arith.constant dense<0xFF800000> : vector<8xf32>
    %67 = vector.multi_reduction <maximumf>, %66, %cst_18 [1] : vector<8x128xf32> to vector<8xf32>
    %68 = vector.shape_cast %67 : vector<8xf32> to vector<8x1xf32>
    %69 = vector.broadcast %68 : vector<8x1xf32> to vector<8x128xf32>
    %70 = arith.subf %66, %69 : vector<8x128xf32>
    %71 = math.exp %70 : vector<8x128xf32>
    %cst_19 = arith.constant 0.000000e+00 : f32
    %72 = vector.broadcast %cst_19 : f32 to vector<8x128xf32>
    %73 = arith.select %36, %71, %72 : vector<8x128xi1>, vector<8x128xf32>
    %cst_20 = arith.constant dense<0.000000e+00> : vector<8xf32>
    %74 = vector.multi_reduction <add>, %73, %cst_20 [1] : vector<8x128xf32> to vector<8xf32>
    %75 = vector.shape_cast %74 : vector<8xf32> to vector<8x1xf32>
    %76 = tpu.reciprocal %75 {approx = true} : vector<8x1xf32> -> vector<8x1xf32>
    %77 = arith.mulf %75, %76 : vector<8x1xf32>
    %cst_21 = arith.constant 2.000000e+00 : f32
    %78 = vector.broadcast %cst_21 : f32 to vector<8x1xf32>
    %79 = arith.subf %78, %77 : vector<8x1xf32>
    %80 = arith.mulf %76, %79 : vector<8x1xf32>
    %81 = vector.broadcast %80 : vector<8x1xf32> to vector<8x128xf32>
    %82 = arith.mulf %73, %81 : vector<8x128xf32>
    %cst_22 = arith.constant 2.000000e+01 : f32
    %83 = vector.broadcast %cst_22 : f32 to vector<8x128xf32>
    %84 = arith.cmpf ogt, %28, %83 : vector<8x128xf32>
    %cst_23 = arith.constant 2.000000e+01 : f32
    %85 = vector.broadcast %cst_23 : f32 to vector<8x128xf32>
    %86 = arith.minimumf %28, %85 : vector<8x128xf32>
    %87 = math.exp %86 : vector<8x128xf32>
    %88 = math.log1p %87 : vector<8x128xf32>
    %89 = arith.select %84, %28, %88 : vector<8x128xi1>, vector<8x128xf32>
    %cst_24 = arith.constant 0.000000e+00 : f32
    %90 = vector.broadcast %cst_24 : f32 to vector<8x128xf32>
    %91 = arith.select %46, %89, %90 : vector<8x128xi1>, vector<8x128xf32>
    %92 = arith.select %41, %28, %91 : vector<8x128xi1>, vector<8x128xf32>
    %93 = arith.select %36, %82, %92 : vector<8x128xi1>, vector<8x128xf32>
    %94 = arith.select %31, %64, %93 : vector<8x128xi1>, vector<8x128xf32>
    %c0_25 = arith.constant 0 : index
    %c0_26 = arith.constant 0 : index
    %95 = vector.load %arg3[%c0_25, %c0_26] : memref<8x128xf32, #tpu.memory_space<vmem>>, vector<8x128xf32>
    tpu.vector_store %arg3[%c0_25, %c0_26], %94 {strides = array<i32>} : memref<8x128xf32, #tpu.memory_space<vmem>>, vector<8x128xf32>,
    return
  }
  func.func @transform_0(%arg0: i32) -> (i32, i32) {
    %c0_i32 = arith.constant 0 : i32
    %c0_i32_0 = arith.constant 0 : i32
    %c0_i32_1 = arith.constant 0 : i32
    return %c0_i32, %c0_i32_0 : i32, i32
  }
  func.func @transform_1(%arg0: i32) -> (i32, i32) {
    %c0_i32 = arith.constant 0 : i32
    %c0_i32_0 = arith.constant 0 : i32
    %c0_i32_1 = arith.constant 0 : i32
    return %c0_i32, %c0_i32_0 : i32, i32
  }
  func.func @transform_2(%arg0: i32) -> (i32, i32) {
    %c0_i32 = arith.constant 0 : i32
    %c0_i32_0 = arith.constant 0 : i32
    %c0_i32_1 = arith.constant 0 : i32
    return %c0_i32, %c0_i32_0 : i32, i32
  }
}

</mosaic_0001>

<bundles_post_ra>
// kernel: simple_encoder_forward.1
= control target key start
LH: loop header
LB: loop body
LE: loop exit
PB: predicated region body
PF: predicated region fallthrough
CT: control target
= control target key end

     0   :  { %7 = vsyncpa [#allocation3], 0  ;;  %s375_s9 = smov [#allocation2]   ;;  %s435_s0 = inlined_call_operand.vmem [shape: s32[8,3], index: 0, kind: input, shape index: {}]   ;;  %s436_s1 = inlined_call_operand.hbm [shape: f32[104,128], index: 1, kind: input, shape index: {}]   ;;  %s437_s2 = inlined_call_operand.vmem [shape: f32[8,128], index: 2, kind: output, shape index: {}]  }
   0x1   :  { %s15_s10 = sshll.u32 %s375_s9, 4  ;;  %s16_s10 = int_to_ptr.vmem [resolvable:$true] %s15_s10 }
   0x2   :  { %s361_s11 = scalar_lea.vmem %s16_s10, 1664  ;;  %p366_p1 = scmp.lt.s32.totalorder %s16_s10, %s16_s10 }
   0x3   :  { %p362_p0 = scmp.ne.s32.totalorder %s16_s10, %s361_s11  ;;  %p367_p2 = scmp.lt.s32.totalorder %s361_s11, %s361_s11 }
   0x5   :  { %p368_p3 = por %p367_p2, %p366_p1 }
   0x7   :  { %p369_p4 = pnand %p368_p3, %p362_p0 }
   0x9   :  { %372 = shalt.err (!%p369_p4)
}
   0xa   :  { %s376_s12 = smov 128   ;;  %s377_s13 = smov 8  }
   0xb   :  { %21 = dma.hbm_to_vmem [thread:$0]  %s436_s1, 1664, %s16_s10, [#allocation3], %s376_s12, %s376_s12, %s377_s13  }
   0xc   :  { %373 = dma.done.wait [#allocation3], 1664  }
   0xd   :  { %374 = vsyncadd [#allocation3], 4294965632  ;;  %v378_v0 = vmov 0   ;;  %v379_v1 = vmov 2   ;;  %v380_v2 = vmov 0.0   ;;  %v27_v3 = vld [vmem:[%s435_s0] sm:$0xff]  ;;  %v25_v13 = vlaneseq }
   0xe   :  { %335 = vset.pattern.permute.xlu0 %v378_v0  ;;  %337 = vset.pattern.permute.xlu1 %v379_v1  ;;  %v56_v4 = vld [vmem:[#allocation2 + $0x38] sm:$0xff]  ;;  %v55_v5 = vld [vmem:[#allocation2 + $0x30] sm:$0xff]  ;;  %v54_v6 = vld [vmem:[#allocation2 + $0x28] sm:$0xff]  ;;  %v381_v7 = vmov 1   ;;  %vm382_vm0 = vmmov 0   ;;  %vm62_vm4 = vcmask 523264  }
   0xf   :  { %297 = vmatprep.subr.mxu0 %v380_v2  ;;  %316 = vmatprep.subr.mxu1 %v380_v2  ;;  %v53_v8 = vld [vmem:[#allocation2 + $0x20] sm:$0xff]  ;;  %v52_v9 = vld [vmem:[#allocation2 + $0x18] sm:$0xff]  ;;  %v51_v10 = vld [vmem:[#allocation2 + $0x10] sm:$0xff]  ;;  %v404_v14 = vand.u32 127, %v25_v13  ;;  %vm141_vm5 = vcmask 261120  }
  0x10   :  { %29 = vperm.xlu0 %335, %v27_v3   ;;  %43 = vperm.xlu1 %337, %v27_v3   ;;  %v50_v11 = vld [vmem:[#allocation2 + $0x8] sm:$0xff]  ;;  %v49_v12 = vld [vmem:[#allocation2] sm:$0xff]  ;;  %v60_v23 = vld [vmem:[#allocation2 + $0x58] sm:$0xff] }
  0x11   :  { %298 = vmatpush3.msra.mxu0 %v56_v4  ;;  %313 = vmatprep.mubr.msk.f32.mxu0 %vm382_vm0, %v380_v2  ;;  %v59_v24 = vld [vmem:[#allocation2 + $0x50] sm:$0xff]  ;;  %v58_v25 = vld [vmem:[#allocation2 + $0x48] sm:$0xff]  ;;  %v57_v26 = vld [vmem:[#allocation2 + $0x40] sm:$0xff]  ;;  %vm216_vm6 = vcmp.ge.s32.totalorder %v404_v14, 16  ;;  %vm217_vm7 = vcmp.lt.s32.totalorder %v404_v14, 24  ;;  %vm215_vm9 = vcmp.lt.s32.totalorder %v404_v14, 16 }
  0x12   :  { %299 = vmatprep.subr.mxu0 %v380_v2  ;;  %324 = vmatprep.mubr.msk.f32.mxu1 %vm382_vm0, %v380_v2  ;;  %v281_v30 = vld [vmem:[#allocation2 + $0x60] ss:$0 sm:$0xff]  ;;  %vm411_vm8 = vmand %vm216_vm6, %vm217_vm7  ;;  %vm222_vm11 = vcmp.ge.s32.totalorder %v404_v14, 56  ;;  %vm223_vm12 = vcmp.lt.s32.totalorder %v404_v14, 88  ;;  %vm219_vm14 = vcmp.ge.s32.totalorder %v404_v14, 24  ;;  %vm220_vm15 = vcmp.lt.s32.totalorder %v404_v14, 56 }
  0x13   :  { %300 = vmatpush3.msra.mxu0 %v55_v5  ;;  %317 = vmatpush3.msra.mxu1 %v60_v23  ;;  %vm224_vm0 = vmand %vm222_vm11, %vm223_vm12 }
  0x14   :  { %336 = vset.pattern.permute.xlu0 %v381_v7  ;;  %301 = vmatprep.subr.mxu0 %v380_v2 }
  0x15   :  { %36 = vperm.xlu0 %336, %v27_v3   ;;  %302 = vmatpush3.msra.mxu0 %v54_v6 }
  0x16   :  { %303 = vmatprep.subr.mxu0 %v380_v2  ;;  %318 = vmatprep.subr.mxu1 %v380_v2 }
  0x17   :  { %304 = vmatpush3.msra.mxu0 %v53_v8  ;;  %319 = vmatpush3.msra.mxu1 %v59_v24 }
  0x18   :  { %305 = vmatprep.subr.mxu0 %v380_v2  ;;  %320 = vmatprep.subr.mxu1 %v380_v2 }
  0x19   :  { %306 = vmatpush3.msra.mxu0 %v52_v9  ;;  %338 = vset.pattern.permute.xlu0 %v379_v1 }
  0x1a   :  { %307 = vmatprep.subr.mxu0 %v380_v2  ;;  %321 = vmatpush3.msra.mxu1 %v58_v25 }
  0x1b   :  { %308 = vmatpush3.msra.mxu0 %v51_v10  ;;  %322 = vmatprep.subr.mxu1 %v380_v2 }
  0x1c   :  { %309 = vmatprep.subr.mxu0 %v380_v2  ;;  %323 = vmatpush3.msra.mxu1 %v57_v26 }
  0x1d   :  { %310 = vmatpush3.msra.mxu0 %v50_v11 }
  0x1e   :  { %311 = vmatprep.subr.mxu0 %v380_v2 }
  0x1f   :  { %312 = vmatpush3.msra.mxu0 %v49_v12 }
  0x8b   :  { %v30_v15 = vpop.permute.xlu0 %29  ;;  %v44_v16 = vpop.permute.xlu1 %43 }
  0x8c   :  { %vm31_vm1 = vcmp.eq.s32.totalorder %v404_v14, %v30_v15  ;;  %vm45_vm2 = vcmp.eq.s32.totalorder %v404_v14, %v44_v16 }
  0x8d   :  { %v277_v18 = vsel %vm31_vm1, 1.0, %v380_v2  ;;  %v279_v20 = vsel %vm45_vm2, 1.0, %v380_v2  ;;  %vm221_vm1 = vmand %vm219_vm14, %vm220_vm15 }
  0x90   :  { %v37_v17 = vpop.permute.xlu0 %36 }
  0x91   :  { %vm38_vm3 = vcmp.eq.s32.totalorder %v404_v14, %v37_v17 }
  0x92   :  { %v278_v19 = vsel %vm38_vm3, 1.0, %v380_v2 }
  0x93   :  { %v41_v21 = vadd.f32 %v278_v19, %v277_v18 }
  0x95   :  { %v48_v22 = vadd.f32 %v279_v20, %v41_v21 }
  0x97   :  { %314 = vmatmul.mubr.msk.f32.vlgmr.msra.gmra.mxu0 %vm62_vm4, %v48_v22 }
 0x157   :  { %v132_v27 = vpop.f32.mrf.mxu0 }
 0x158   :  { %339 = vtanh.f32 %v132_v27 }
 0x159   :  { %v315_v28 = vpop.f32.mrf.mxu0 }
 0x165   :  { %v340_v29 = vpop.eup %339 }
 0x166   :  { %325 = vmatmul.mubr.msk.f32.vlgmr.msra.gmra.mxu1 %vm141_vm5, %v340_v29 }
 0x226   :  { %v211_v31 = vpop.f32.mrf.mxu1 }
 0x227   :  { %v212_v33 = vadd.f32 %v281_v30, %v211_v31 }
 0x228   :  { %v326_v34 = vpop.f32.mrf.mxu1 }
 0x229   :  { %v239_v35 = vsel %vm411_vm8, %v212_v33, -1e+30  ;;  %v225_v36 = vsel %vm215_vm9, %v212_v33, -1e+30  ;;  %v254_v47 = vmin.f32 %v212_v33, 20.0  ;;  %vm253_vm13 = vcmp.gt.f32.partialorder %v212_v33, 20.0 }
 0x22a   :  { %240 = vmax.xlane.f32.xlu1 %v239_v35  ;;  %226 = vmax.xlane.f32.xlu0 %v225_v36 }
 0x22b   :  { %v255_v48 = vmul.f32 1.442695, %v254_v47 }
 0x2b3   :  { %v241_v37 = vpop.xlane.xlu1 %240  ;;  %v227_v38 = vpop.xlane.xlu0 %226 }
 0x2b4   :  { %v242_v39 = vsub.f32 %v239_v35, %v241_v37  ;;  %v228_v40 = vsub.f32 %v225_v36, %v227_v38 }
 0x2b6   :  { %v243_v41 = vmul.f32 1.442695, %v242_v39  ;;  %v229_v42 = vmul.f32 1.442695, %v228_v40 }
 0x2b8   :  { %341 = vpow2.f32 %v243_v41 }
 0x2b9   :  { %343 = vpow2.f32 %v229_v42 }
 0x2ba   :  { %345 = vpow2.f32 %v255_v48 }
 0x2c5   :  { %v342_v43 = vpop.eup %341 }
 0x2c6   :  { %v344_v44 = vpop.eup %343  ;;  %v245_v45 = vsel %vm411_vm8, %v342_v43, 0.0 }
 0x2c7   :  { %246 = vadd.xlane.f32.xlu1 %v245_v45  ;;  %v231_v46 = vsel %vm215_vm9, %v344_v44, 0.0  ;;  %v346_v49 = vpop.eup %345 }
 0x2c8   :  { %232 = vadd.xlane.f32.xlu0 %v231_v46  ;;  %v257_v50 = vadd.f32 1.0, %v346_v49  ;;  %v260_v53 = vmul.f32 -0.5, %v346_v49  ;;  %v263_v56 = vand.u32 2147483647, %v346_v49 }
 0x2ca   :  { %347 = vlog2.f32 %v257_v50  ;;  %v261_v55 = vadd.f32 1.0, %v260_v53  ;;  %vm264_vm10 = vcmp.lt.f32.partialorder %v263_v56, 0.0004427343 }
 0x2cc   :  { %v262_v58 = vmul.f32 %v346_v49, %v261_v55 }
 0x2d7   :  { %v348_v54 = vpop.eup %347 }
 0x2d8   :  { %v259_v57 = vmul.f32 0.6931472, %v348_v54 }
 0x2da   :  { %v265_v59 = vsel %vm264_vm10, %v262_v58, %v259_v57 }
 0x2db   :  { %v266_v63 = vsel %vm253_vm13, %v212_v33, %v265_v59 }
 0x2dc   :  { %v267_v3 = vsel %vm224_vm0, %v266_v63, 0.0 }
 0x2dd   :  { %v268_v7 = vsel %vm221_vm1, %v212_v33, %v267_v3 }
 0x350   :  { %v247_v51 = vpop.xlane.xlu1 %246 }
 0x351   :  { %349 = vrcp.f32 %v247_v51  ;;  %v233_v52 = vpop.xlane.xlu0 %232 }
 0x352   :  { %351 = vrcp.f32 %v233_v52 }
 0x35e   :  { %v350_v60 = vpop.eup %349 }
 0x35f   :  { %v352_v61 = vpop.eup %351  ;;  %v249_v62 = vmul.f32 %v350_v60, %v247_v51 }
 0x360   :  { %v235_v0 = vmul.f32 %v352_v61, %v233_v52 }
 0x361   :  { %v250_v1 = vsub.f32 2.0, %v249_v62 }
 0x362   :  { %v236_v2 = vsub.f32 2.0, %v235_v0 }
 0x363   :  { %v251_v4 = vmul.f32 %v350_v60, %v250_v1 }
 0x364   :  { %v237_v5 = vmul.f32 %v352_v61, %v236_v2 }
 0x365   :  { %v252_v6 = vmul.f32 %v251_v4, %v245_v45 }
 0x366   :  { %v238_v8 = vmul.f32 %v237_v5, %v231_v46 }
 0x367   :  { %v269_v9 = vsel %vm411_vm8, %v252_v6, %v268_v7 }
 0x368   :  { %v270_v10 = vsel %vm215_vm9, %v238_v8, %v269_v9 }
 0x369   :  { %271 = vst [vmem:[%s437_s2] sm:$0xff] %v270_v10 }
 0x36a   :  { %276 = vsyncpa [#allocation3], 1 }

</bundles_post_ra>
